<compile_context>
chip_gen: v7x
topology: tpu7x:2x2x1
jax: 0.10.0
libtpu: 0.0.40
codegen_flags: <defaults>
</compile_context>

<pallas_src>
import jax
import jax.numpy as jnp
import numpy as np
from jax import lax
from jax.experimental import pallas as pl
from jax.experimental.pallas import tpu as pltpu

C = 16  # channel count fixed by the PyTorch module (Conv2d(16, 16, 1))


def _fused_kernel(x1_ref, x3_ref, w1_ref, b1_ref, w2_ref, b2_ref,
                  w3_ref, b3_ref, o_ref):
    nb = x1_ref.shape[0]          # static in-block batch count

    w1 = w1_ref[...]              # (C, C) bf16
    w2 = w2_ref[...]              # (C, C) bf16
    w3 = w3_ref[...]              # (C, C) bf16, pre-scaled by 2
    b1 = b1_ref[...]              # (C, 1) f32
    b2 = b2_ref[...]              # (C, 1) f32
    b3 = b3_ref[...]              # (C, 1) f32, pre-scaled by 2

    def compute_one(b):
        x1 = x1_ref[b]            # (C, ts) f32
        x3 = x3_ref[b]            # (C, ts) f32

        # v3 = relu(conv(x1) + x3)      -- bf16 operands, f32 accumulate
        v1 = jnp.dot(w1, x1.astype(jnp.bfloat16),
                     preferred_element_type=jnp.float32) + b1
        v3 = jnp.maximum(v1 + x3, 0.0)

        # v6 = relu(conv_1(v3) + x3)
        v4 = jnp.dot(w2, v3.astype(jnp.bfloat16),
                     preferred_element_type=jnp.float32) + b2
        v6 = jnp.maximum(v4 + x3, 0.0)

        # v9 = relu(conv_2(v6) * 2)     (w3/b3 pre-scaled by 2 in wrapper)
        v7 = jnp.dot(w3, v6.astype(jnp.bfloat16),
                     preferred_element_type=jnp.float32) + b3
        o_ref[b] = jnp.maximum(v7, 0.0)

    if nb <= 8:
        for b in range(nb):       # static unroll, keeps LLO schedule tight
            compute_one(b)
    else:
        def body(b, carry):
            compute_one(b)
            return carry
        lax.fori_loop(0, nb, body, 0)


def fused_forward(x1_nchw, x3_nchw, params, *, max_tile=8192,
                  target_block_bytes=1 << 20, max_nb=64):
    """x1, x3: (N, 16, H, W) float32.  Returns (N, 16, H, W) float32."""
    (w1, b1), (w2, b2), (w3, b3) = params
    N, Cin, H, W = x1_nchw.shape
    assert Cin == C
    HW = H * W

    # Free reshapes: NCHW -> (N, C, H*W).  Spatial axis is lane-dense (128).
    x1m = x1_nchw.reshape(N, C, HW)
    x3m = x3_nchw.reshape(N, C, HW)

    # ---- tile / grid selection -------------------------------------------
    per_elem_bytes = C * HW * 4
    if HW > max_tile:
        ts, nb = max_tile, 1                      # large spatial: tile spatial axis
    else:
        ts = HW                                   # small spatial: fold batch into the block
        nb = int(max(1, min(N, max_nb, target_block_bytes // per_elem_bytes)))

    n_b = pl.cdiv(N, nb)
    n_s = pl.cdiv(HW, ts)

    # Guarantee >=2 parallel grid steps (v7x: 2 TensorCores) when the input is
    # big enough that the extra ~0.35us step overhead stays amortised.
    if n_b * n_s == 1 and N * per_elem_bytes >= (256 << 10):
        if N >= 2:
            nb = pl.cdiv(N, 2)
        else:
            ts2 = ((pl.cdiv(HW, 2) + 127) // 128) * 128
            if 0 < ts2 < HW:
                ts = ts2
        n_b = pl.cdiv(N, nb)
        n_s = pl.cdiv(HW, ts)

    # ---- weight / bias prep ------------------------------------------------
    def wmat(w):                                  # (out, in, 1, 1) -> (out, in)
        return w[:, :, 0, 0]

    # bf16 MXU operands (single-pass matmul), biases stay f32.
    w1m = wmat(w1).astype(jnp.bfloat16)
    w2m = wmat(w2).astype(jnp.bfloat16)
    w3m = (wmat(w3) * 2.0).astype(jnp.bfloat16)   # fold v7 + v7 (relu(2z)=2relu(z))
    b1r, b2r = b1.reshape(C, 1), b2.reshape(C, 1)
    b3r = (b3 * 2.0).reshape(C, 1)

    grid = (n_b, n_s)
    x_spec = pl.BlockSpec((nb, C, ts), lambda i, s: (i, 0, s))
    w_spec = pl.BlockSpec((C, C), lambda i, s: (0, 0))
    b_spec = pl.BlockSpec((C, 1), lambda i, s: (0, 0))

    cost = pl.CostEstimate(
        flops=3 * 2 * N * HW * C * C,
        transcendentals=0,
        bytes_accessed=3 * N * C * HW * 4,        # 2 inputs + 1 output, f32
    )

    out = pl.pallas_call(
        _fused_kernel,
        out_shape=jax.ShapeDtypeStruct((N, C, HW), jnp.float32),
        grid_spec=pltpu.PrefetchScalarGridSpec(
            num_scalar_prefetch=0,
            grid=grid,
            in_specs=[x_spec, x_spec,
                      w_spec, b_spec, w_spec, b_spec, w_spec, b_spec],
            out_specs=x_spec,
        ),
        compiler_params=pltpu.CompilerParams(
            dimension_semantics=("parallel", "parallel")),
        cost_estimate=cost,
    )(x1m, x3m, w1m, b1r, w2m, b2r, w3m, b3r)

    return out.reshape(N, C, H, W)                # free reshape back to NCHW


def _init_params(key):
    """Deterministic Conv2d-style init: uniform(-1/sqrt(fan_in), 1/sqrt(fan_in))."""
    params = []
    bound = 1.0 / np.sqrt(C * 1 * 1)
    for _ in range(3):
        kw, kb, key = jax.random.split(key, 3)
        w = jax.random.uniform(kw, (C, C, 1, 1), jnp.float32, -bound, bound)
        b = jax.random.uniform(kb, (C,), jnp.float32, -bound, bound)
        params.append((w, b))
    return params


def _reference(x1, x3, params):
    """Pure-JAX f32 reference of the PyTorch forward (1x1 convs as einsum)."""
    (w1, b1), (w2, b2), (w3, b3) = params

    def conv1x1(x, w, b):
        y = jnp.einsum('nchw,oc->nohw', x, w[:, :, 0, 0])
        return y + b[None, :, None, None]

    v3 = jnp.maximum(conv1x1(x1, w1, b1) + x3, 0.0)
    v6 = jnp.maximum(conv1x1(v3, w2, b2) + x3, 0.0)
    v7 = conv1x1(v6, w3, b3)
    return jnp.maximum(v7 + v7, 0.0)


if __name__ == "__main__":
    key = jax.random.PRNGKey(0)
    k1, k2, kp = jax.random.split(key, 3)

    N, H, W = 2, 16, 16
    x1 = jax.random.normal(k1, (N, C, H, W), jnp.float32)
    x3 = jax.random.normal(k2, (N, C, H, W), jnp.float32)
    params = _init_params(kp)

    out = fused_forward(x1, x3, params)
    out = jax.block_until_ready(out)

    ref = _reference(x1, x3, params)
    # bf16 matmul operands (f32 accumulation) -> slightly looser tolerance
    # than the pure-f32 reference.
    np.testing.assert_allclose(np.asarray(out), np.asarray(ref),
                               rtol=5e-2, atol=5e-2)
    print("KERNEL_OK")
</pallas_src>

<mosaic_0001>
module attributes {stable_mosaic.version = 11 : i64} {
  func.func @_fused_kernel(%arg0: i32, %arg1: i32, %arg2: memref<2x16x256xf32, #tpu.memory_space<vmem>>, %arg3: memref<2x16x256xf32, #tpu.memory_space<vmem>>, %arg4: memref<16x16xbf16, #tpu.memory_space<vmem>>, %arg5: memref<16x1xf32, #tpu.memory_space<vmem>>, %arg6: memref<16x16xbf16, #tpu.memory_space<vmem>>, %arg7: memref<16x1xf32, #tpu.memory_space<vmem>>, %arg8: memref<16x16xbf16, #tpu.memory_space<vmem>>, %arg9: memref<16x1xf32, #tpu.memory_space<vmem>>, %arg10: memref<2x16x256xf32, #tpu.memory_space<vmem>>) attributes {dimension_semantics = [#tpu.dimension_semantics<parallel>, #tpu.dimension_semantics<parallel>], iteration_bounds = array<i64: 1, 1>, scalar_prefetch = 0 : i64, scratch_operands = 0 : i64, tpu.core_type = #tpu.core_type<tc>, window_params = [{transform_indices = @transform_0, window_bounds = array<i64: 2, 16, 256>}, {transform_indices = @transform_1, window_bounds = array<i64: 2, 16, 256>}, {pipeline_mode = #tpu.pipeline_mode<synchronous>, transform_indices = @transform_2, window_bounds = array<i64: 16, 16>}, {pipeline_mode = #tpu.pipeline_mode<synchronous>, transform_indices = @transform_3, window_bounds = array<i64: 16, 1>}, {pipeline_mode = #tpu.pipeline_mode<synchronous>, transform_indices = @transform_4, window_bounds = array<i64: 16, 16>}, {pipeline_mode = #tpu.pipeline_mode<synchronous>, transform_indices = @transform_5, window_bounds = array<i64: 16, 1>}, {pipeline_mode = #tpu.pipeline_mode<synchronous>, transform_indices = @transform_6, window_bounds = array<i64: 16, 16>}, {pipeline_mode = #tpu.pipeline_mode<synchronous>, transform_indices = @transform_7, window_bounds = array<i64: 16, 1>}, {transform_indices = @transform_8, window_bounds = array<i64: 2, 16, 256>}]} {
    %c0 = arith.constant 0 : index
    %c0_0 = arith.constant 0 : index
    %0 = vector.load %arg4[%c0, %c0_0] : memref<16x16xbf16, #tpu.memory_space<vmem>>, vector<16x16xbf16>
    %c0_1 = arith.constant 0 : index
    %c0_2 = arith.constant 0 : index
    %1 = vector.load %arg6[%c0_1, %c0_2] : memref<16x16xbf16, #tpu.memory_space<vmem>>, vector<16x16xbf16>
    %c0_3 = arith.constant 0 : index
    %c0_4 = arith.constant 0 : index
    %2 = vector.load %arg8[%c0_3, %c0_4] : memref<16x16xbf16, #tpu.memory_space<vmem>>, vector<16x16xbf16>
    %c0_5 = arith.constant 0 : index
    %c0_6 = arith.constant 0 : index
    %3 = vector.load %arg5[%c0_5, %c0_6] : memref<16x1xf32, #tpu.memory_space<vmem>>, vector<16x1xf32>
    %c0_7 = arith.constant 0 : index
    %c0_8 = arith.constant 0 : index
    %4 = vector.load %arg7[%c0_7, %c0_8] : memref<16x1xf32, #tpu.memory_space<vmem>>, vector<16x1xf32>
    %c0_9 = arith.constant 0 : index
    %c0_10 = arith.constant 0 : index
    %5 = vector.load %arg9[%c0_9, %c0_10] : memref<16x1xf32, #tpu.memory_space<vmem>>, vector<16x1xf32>
    %c0_11 = arith.constant 0 : index
    %c0_12 = arith.constant 0 : index
    %c0_13 = arith.constant 0 : index
    %6 = vector.load %arg2[%c0_11, %c0_12, %c0_13] : memref<2x16x256xf32, #tpu.memory_space<vmem>>, vector<1x16x256xf32>
    %7 = vector.shape_cast %6 : vector<1x16x256xf32> to vector<16x256xf32>
    %c0_14 = arith.constant 0 : index
    %c0_15 = arith.constant 0 : index
    %c0_16 = arith.constant 0 : index
    %8 = vector.load %arg3[%c0_14, %c0_15, %c0_16] : memref<2x16x256xf32, #tpu.memory_space<vmem>>, vector<1x16x256xf32>
    %9 = vector.shape_cast %8 : vector<1x16x256xf32> to vector<16x256xf32>
    %10 = arith.truncf %7 : vector<16x256xf32> to vector<16x256xbf16>
    %cst = arith.constant dense<0.000000e+00> : vector<16x256xf32>
    %11 = tpu.matmul %0, %10, %cst {dimension_numbers = #tpu.dot_dimension_numbers<[1], [0], [0], [1], [0, 0, 1, 1], [], []>} : vector<16x16xbf16>, vector<16x256xbf16>, vector<16x256xf32> -> vector<16x256xf32>
    %12 = vector.broadcast %3 : vector<16x1xf32> to vector<16x256xf32>
    %13 = arith.addf %11, %12 : vector<16x256xf32>
    %14 = arith.addf %13, %9 : vector<16x256xf32>
    %cst_17 = arith.constant 0.000000e+00 : f32
    %15 = vector.broadcast %cst_17 : f32 to vector<16x256xf32>
    %16 = arith.maximumf %14, %15 : vector<16x256xf32>
    %17 = arith.truncf %16 : vector<16x256xf32> to vector<16x256xbf16>
    %cst_18 = arith.constant dense<0.000000e+00> : vector<16x256xf32>
    %18 = tpu.matmul %1, %17, %cst_18 {dimension_numbers = #tpu.dot_dimension_numbers<[1], [0], [0], [1], [0, 0, 1, 1], [], []>} : vector<16x16xbf16>, vector<16x256xbf16>, vector<16x256xf32> -> vector<16x256xf32>
    %19 = vector.broadcast %4 : vector<16x1xf32> to vector<16x256xf32>
    %20 = arith.addf %18, %19 : vector<16x256xf32>
    %21 = arith.addf %20, %9 : vector<16x256xf32>
    %cst_19 = arith.constant 0.000000e+00 : f32
    %22 = vector.broadcast %cst_19 : f32 to vector<16x256xf32>
    %23 = arith.maximumf %21, %22 : vector<16x256xf32>
    %24 = arith.truncf %23 : vector<16x256xf32> to vector<16x256xbf16>
    %cst_20 = arith.constant dense<0.000000e+00> : vector<16x256xf32>
    %25 = tpu.matmul %2, %24, %cst_20 {dimension_numbers = #tpu.dot_dimension_numbers<[1], [0], [0], [1], [0, 0, 1, 1], [], []>} : vector<16x16xbf16>, vector<16x256xbf16>, vector<16x256xf32> -> vector<16x256xf32>
    %26 = vector.broadcast %5 : vector<16x1xf32> to vector<16x256xf32>
    %27 = arith.addf %25, %26 : vector<16x256xf32>
    %cst_21 = arith.constant 0.000000e+00 : f32
    %28 = vector.broadcast %cst_21 : f32 to vector<16x256xf32>
    %29 = arith.maximumf %27, %28 : vector<16x256xf32>
    %c0_22 = arith.constant 0 : index
    %c0_23 = arith.constant 0 : index
    %c0_24 = arith.constant 0 : index
    %30 = vector.load %arg10[%c0_22, %c0_23, %c0_24] : memref<2x16x256xf32, #tpu.memory_space<vmem>>, vector<1x16x256xf32>
    %31 = vector.shape_cast %30 : vector<1x16x256xf32> to vector<16x256xf32>
    %32 = vector.shape_cast %29 : vector<16x256xf32> to vector<1x16x256xf32>
    tpu.vector_store %arg10[%c0_22, %c0_23, %c0_24], %32 {strides = array<i32>} : memref<2x16x256xf32, #tpu.memory_space<vmem>>, vector<1x16x256xf32>,
    %c1 = arith.constant 1 : index
    %c0_25 = arith.constant 0 : index
    %c0_26 = arith.constant 0 : index
    %33 = vector.load %arg2[%c1, %c0_25, %c0_26] : memref<2x16x256xf32, #tpu.memory_space<vmem>>, vector<1x16x256xf32>
    %34 = vector.shape_cast %33 : vector<1x16x256xf32> to vector<16x256xf32>
    %c1_27 = arith.constant 1 : index
    %c0_28 = arith.constant 0 : index
    %c0_29 = arith.constant 0 : index
    %35 = vector.load %arg3[%c1_27, %c0_28, %c0_29] : memref<2x16x256xf32, #tpu.memory_space<vmem>>, vector<1x16x256xf32>
    %36 = vector.shape_cast %35 : vector<1x16x256xf32> to vector<16x256xf32>
    %37 = arith.truncf %34 : vector<16x256xf32> to vector<16x256xbf16>
    %cst_30 = arith.constant dense<0.000000e+00> : vector<16x256xf32>
    %38 = tpu.matmul %0, %37, %cst_30 {dimension_numbers = #tpu.dot_dimension_numbers<[1], [0], [0], [1], [0, 0, 1, 1], [], []>} : vector<16x16xbf16>, vector<16x256xbf16>, vector<16x256xf32> -> vector<16x256xf32>
    %39 = vector.broadcast %3 : vector<16x1xf32> to vector<16x256xf32>
    %40 = arith.addf %38, %39 : vector<16x256xf32>
    %41 = arith.addf %40, %36 : vector<16x256xf32>
    %cst_31 = arith.constant 0.000000e+00 : f32
    %42 = vector.broadcast %cst_31 : f32 to vector<16x256xf32>
    %43 = arith.maximumf %41, %42 : vector<16x256xf32>
    %44 = arith.truncf %43 : vector<16x256xf32> to vector<16x256xbf16>
    %cst_32 = arith.constant dense<0.000000e+00> : vector<16x256xf32>
    %45 = tpu.matmul %1, %44, %cst_32 {dimension_numbers = #tpu.dot_dimension_numbers<[1], [0], [0], [1], [0, 0, 1, 1], [], []>} : vector<16x16xbf16>, vector<16x256xbf16>, vector<16x256xf32> -> vector<16x256xf32>
    %46 = vector.broadcast %4 : vector<16x1xf32> to vector<16x256xf32>
    %47 = arith.addf %45, %46 : vector<16x256xf32>
    %48 = arith.addf %47, %36 : vector<16x256xf32>
    %cst_33 = arith.constant 0.000000e+00 : f32
    %49 = vector.broadcast %cst_33 : f32 to vector<16x256xf32>
    %50 = arith.maximumf %48, %49 : vector<16x256xf32>
    %51 = arith.truncf %50 : vector<16x256xf32> to vector<16x256xbf16>
    %cst_34 = arith.constant dense<0.000000e+00> : vector<16x256xf32>
    %52 = tpu.matmul %2, %51, %cst_34 {dimension_numbers = #tpu.dot_dimension_numbers<[1], [0], [0], [1], [0, 0, 1, 1], [], []>} : vector<16x16xbf16>, vector<16x256xbf16>, vector<16x256xf32> -> vector<16x256xf32>
    %53 = vector.broadcast %5 : vector<16x1xf32> to vector<16x256xf32>
    %54 = arith.addf %52, %53 : vector<16x256xf32>
    %cst_35 = arith.constant 0.000000e+00 : f32
    %55 = vector.broadcast %cst_35 : f32 to vector<16x256xf32>
    %56 = arith.maximumf %54, %55 : vector<16x256xf32>
    %c1_36 = arith.constant 1 : index
    %c0_37 = arith.constant 0 : index
    %c0_38 = arith.constant 0 : index
    %57 = vector.load %arg10[%c1_36, %c0_37, %c0_38] : memref<2x16x256xf32, #tpu.memory_space<vmem>>, vector<1x16x256xf32>
    %58 = vector.shape_cast %57 : vector<1x16x256xf32> to vector<16x256xf32>
    %59 = vector.shape_cast %56 : vector<16x256xf32> to vector<1x16x256xf32>
    tpu.vector_store %arg10[%c1_36, %c0_37, %c0_38], %59 {strides = array<i32>} : memref<2x16x256xf32, #tpu.memory_space<vmem>>, vector<1x16x256xf32>,
    return
  }
  func.func @transform_0(%arg0: i32, %arg1: i32) -> (i32, i32, i32) {
    %c0_i32 = arith.constant 0 : i32
    %c0_i32_0 = arith.constant 0 : i32
    return %arg0, %c0_i32, %arg1 : i32, i32, i32
  }
  func.func @transform_1(%arg0: i32, %arg1: i32) -> (i32, i32, i32) {
    %c0_i32 = arith.constant 0 : i32
    %c0_i32_0 = arith.constant 0 : i32
    return %arg0, %c0_i32, %arg1 : i32, i32, i32
  }
  func.func @transform_2(%arg0: i32, %arg1: i32) -> (i32, i32) {
    %c0_i32 = arith.constant 0 : i32
    %c0_i32_0 = arith.constant 0 : i32
    %c0_i32_1 = arith.constant 0 : i32
    return %c0_i32, %c0_i32_0 : i32, i32
  }
  func.func @transform_3(%arg0: i32, %arg1: i32) -> (i32, i32) {
    %c0_i32 = arith.constant 0 : i32
    %c0_i32_0 = arith.constant 0 : i32
    %c0_i32_1 = arith.constant 0 : i32
    return %c0_i32, %c0_i32_0 : i32, i32
  }
  func.func @transform_4(%arg0: i32, %arg1: i32) -> (i32, i32) {
    %c0_i32 = arith.constant 0 : i32
    %c0_i32_0 = arith.constant 0 : i32
    %c0_i32_1 = arith.constant 0 : i32
    return %c0_i32, %c0_i32_0 : i32, i32
  }
  func.func @transform_5(%arg0: i32, %arg1: i32) -> (i32, i32) {
    %c0_i32 = arith.constant 0 : i32
    %c0_i32_0 = arith.constant 0 : i32
    %c0_i32_1 = arith.constant 0 : i32
    return %c0_i32, %c0_i32_0 : i32, i32
  }
  func.func @transform_6(%arg0: i32, %arg1: i32) -> (i32, i32) {
    %c0_i32 = arith.constant 0 : i32
    %c0_i32_0 = arith.constant 0 : i32
    %c0_i32_1 = arith.constant 0 : i32
    return %c0_i32, %c0_i32_0 : i32, i32
  }
  func.func @transform_7(%arg0: i32, %arg1: i32) -> (i32, i32) {
    %c0_i32 = arith.constant 0 : i32
    %c0_i32_0 = arith.constant 0 : i32
    %c0_i32_1 = arith.constant 0 : i32
    return %c0_i32, %c0_i32_0 : i32, i32
  }
  func.func @transform_8(%arg0: i32, %arg1: i32) -> (i32, i32, i32) {
    %c0_i32 = arith.constant 0 : i32
    %c0_i32_0 = arith.constant 0 : i32
    return %arg0, %c0_i32, %arg1 : i32, i32, i32
  }
}

</mosaic_0001>

<bundles_post_ra>
// kernel: tpu_custom_call.1
= control target key start
LH: loop header
LB: loop body
LE: loop exit
PB: predicated region body
PF: predicated region fallthrough
CT: control target
= control target key end

     0   :  { %13 = vsyncpa [#allocation3], 0  ;;  %s734_s0 = inlined_call_operand.hbm [shape: f32[2,16,256], index: 0, kind: input, shape index: {}]   ;;  %s735_s1 = inlined_call_operand.hbm [shape: f32[2,16,256], index: 1, kind: input, shape index: {}]   ;;  %s736_s2 = inlined_call_operand.vmem [shape: bf16[16,16], index: 2, kind: input, shape index: {}]   ;;  %s737_s3 = inlined_call_operand.vmem [shape: f32[16,1], index: 3, kind: input, shape index: {}]   ;;  %s738_s4 = inlined_call_operand.vmem [shape: bf16[16,16], index: 4, kind: input, shape index: {}]   ;;  %s739_s5 = inlined_call_operand.vmem [shape: f32[16,1], index: 5, kind: input, shape index: {}]   ;;  %s740_s6 = inlined_call_operand.vmem [shape: bf16[16,16], index: 6, kind: input, shape index: {}]   ;;  %s741_s7 = inlined_call_operand.vmem [shape: f32[16,1], index: 7, kind: input, shape index: {}]   ;;  %s742_s8 = inlined_call_operand.hbm [shape: f32[2,16,256], index: 8, kind: output, shape index: {}]  }
   0x1   :  { %14 = vsyncpa [#allocation6], 0 }
   0x2   :  { %15 = vsyncpa [#allocation4], 0  ;;  %s573_s27 = smov [#allocation2]   ;;  %s501_s9 = scalar_lea.hbm %s734_s0, 1024 }
   0x3   :  { %s21_s28 = sshll.u32 %s573_s27, 4  ;;  %p502_p0 = scmp.ne.s32.totalorder %s734_s0, %s501_s9  ;;  %s22_s28 = int_to_ptr.vmem [resolvable:$true] %s21_s28 }
   0x4   :  { %p505_p1 = scmp.lt.u32.totalorder %s501_s9, %s734_s0 }
   0x6   :  { %p507_p2 = pnand %p505_p1, %p502_p0 }
   0x8   :  { %510 = shalt.err (!%p507_p2)
}
   0x9   :  { %s511_s14 = scalar_lea.vmem %s22_s28, 1024  ;;  %p516_p4 = scmp.lt.s32.totalorder %s22_s28, %s22_s28 }
   0xa   :  { %p512_p3 = scmp.ne.s32.totalorder %s22_s28, %s511_s14  ;;  %p517_p5 = scmp.lt.s32.totalorder %s511_s14, %s511_s14 }
   0xc   :  { %p518_p6 = por %p517_p5, %p516_p4 }
   0xe   :  { %p519_p7 = pnand %p518_p6, %p512_p3 }
  0x10   :  { %522 = shalt.err (!%p519_p7)
}
  0x11   :  { %s574_s15 = smov 256   ;;  %s575_s16 = smov 16  }
  0x12   :  { %27 = dma.hbm_to_vmem [thread:$0]  %s734_s0, 1024, %s22_s28, [#allocation3], %s574_s15, %s574_s15, %s575_s16  }
  0x13   :  { %s576_s19 = smov [#allocation5]   ;;  %s523_s23 = scalar_lea.hbm %s735_s1, 1024 }
  0x14   :  { %s33_s20 = sshll.u32 %s576_s19, 4  ;;  %p524_p8 = scmp.ne.s32.totalorder %s735_s1, %s523_s23  ;;  %s34_s20 = int_to_ptr.vmem [resolvable:$true] %s33_s20 }
  0x15   :  { %p527_p9 = scmp.lt.u32.totalorder %s523_s23, %s735_s1 }
  0x17   :  { %p529_p10 = pnand %p527_p9, %p524_p8 }
  0x19   :  { %532 = shalt.err (!%p529_p10)
}
  0x1a   :  { %s533_s29 = scalar_lea.vmem %s34_s20, 1024  ;;  %p538_p12 = scmp.lt.s32.totalorder %s34_s20, %s34_s20 }
  0x1b   :  { %p534_p11 = scmp.ne.s32.totalorder %s34_s20, %s533_s29  ;;  %p539_p13 = scmp.lt.s32.totalorder %s533_s29, %s533_s29 }
  0x1d   :  { %p540_p0 = por %p539_p13, %p538_p12 }
  0x1f   :  { %p541_p1 = pnand %p540_p0, %p534_p11 }
  0x21   :  { %544 = shalt.err (!%p541_p1)
}
  0x22   :  { %39 = dma.hbm_to_vmem [thread:$0]  %s735_s1, 1024, %s34_s20, [#allocation6], %s574_s15, %s574_s15, %s575_s16  }
  0x23   :  { %567 = dma.done.wait [#allocation3], 1024  }
  0x24   :  { %568 = vsyncadd [#allocation3], 4294966272 }
  0x25   :  { %569 = dma.done.wait [#allocation6], 1024  }
  0x26   :  { %570 = vsyncadd [#allocation6], 4294966272  ;;  %v577_v0 = vmov 0   ;;  %v72_v1 = vld [vmem:[#allocation2 + $0x8] sm:$0xff]  ;;  %v74_v2 = vld [vmem:[#allocation2 + $0x18] sm:$0xff]  ;;  %vm96_vm0 = vcmask 130048  }
  0x27   :  { %132 = vmatprep.mubr.bf16.mxu0 %v577_v0  ;;  %496 = vset.pattern.permute.xlu0 %v577_v0  ;;  %v71_v3 = vld [vmem:[#allocation2] sm:$0xff]  ;;  %v80_v4 = vpack.c.bf16 %v74_v2, %v72_v1  ;;  %v73_v5 = vld [vmem:[#allocation2 + $0x10] sm:$0xff]  ;;  %v66_v9 = vld [vmem:[%s737_s3 + $0x8] sm:$0xff] }
  0x28   :  { %203 = vmatprep.mubr.bf16.mxu1 %v577_v0  ;;  %497 = vset.pattern.permute.xlu1 %v577_v0  ;;  %v79_v6 = vpack.c.bf16 %v73_v5, %v71_v3  ;;  %v65_v7 = vld [vmem:[%s737_s3] sm:$0xff]  ;;  %v68_v12 = vld [vmem:[%s739_s5 + $0x8] sm:$0xff]  ;;  %v77_v22 = vld [vmem:[#allocation5 + $0x10] sm:$0xff] }
  0x29   :  { %100 = vmatprep.subr.bf16.mxu0 %v80_v4  ;;  %v498_v8 = vld [vmem:[%s736_s2] sm:$0xff]   ;;  %83 = vperm.xlu0 %496, %v65_v7   ;;  %v70_v13 = vld [vmem:[%s741_s7 + $0x8] sm:$0xff]  ;;  %v78_v27 = vld [vmem:[#allocation5 + $0x18] sm:$0xff] }
  0x2a   :  { %101 = vmatpush1.bf16.msra.mxu0 %v79_v6  ;;  %v69_v10 = vld [vmem:[%s741_s7] sm:$0xff]  ;;  %v76_v19 = vld [vmem:[#allocation5 + $0x8] sm:$0xff]  ;;  %v297_v35 = vld [vmem:[#allocation2 + $0x38] sm:$0xff] }
  0x2b   :  { %v67_v11 = vld [vmem:[%s739_s5] sm:$0xff]  ;;  %v295_v34 = vld [vmem:[#allocation2 + $0x28] sm:$0xff]  ;;  %v296_v42 = vld [vmem:[#allocation2 + $0x30] sm:$0xff] }
  0x2c   :  { %155 = vperm.xlu1 %497, %v67_v11   ;;  %v75_v15 = vld [vmem:[#allocation5] sm:$0xff]  ;;  %v304_v40 = vpack.c.bf16 %v297_v35, %v295_v34  ;;  %v300_v4 = vld [vmem:[#allocation5 + $0x28] sm:$0xff]  ;;  %v301_v7 = vld [vmem:[#allocation5 + $0x30] sm:$0xff] }
  0x2d   :  { %482 = vmatmul.mubr.msk.bf16.vlgmr.msra.gmra.mrb[0].mxu0 %vm96_vm0, %v498_v8  ;;  %88 = vperm.xlu0 %496, %v66_v9   ;;  %v294_v41 = vld [vmem:[#allocation2 + $0x20] sm:$0xff] }
  0x2e   :  { %274 = vmatprep.mubr.bf16.mxu0 %v577_v0  ;;  %v499_v43 = vld [vmem:[%s738_s4] sm:$0xff]   ;;  %v303_v44 = vpack.c.bf16 %v296_v42, %v294_v41 }
  0x2f   :  { %v299_v63 = vld [vmem:[#allocation5 + $0x20] sm:$0xff] }
  0x30   :  { %160 = vperm.xlu1 %497, %v68_v12   ;;  %v302_v12 = vld [vmem:[#allocation5 + $0x38] sm:$0xff] }
  0x31   :  { %226 = vperm.xlu0 %496, %v69_v10  }
  0x34   :  { %231 = vperm.xlu1 %497, %v70_v13  }
  0xa8   :  { %v681_v14 = vpop.permute.xlu0 %83 }
  0xab   :  { %v696_v45 = vpop.permute.xlu1 %155 }
  0xac   :  { %v684_v20 = vpop.permute.xlu0 %88 }
  0xaf   :  { %v699_v49 = vpop.permute.xlu1 %160 }
 0x100   :  { %v134_v16 = vpop.f32.mrb[0].mxu0 }
 0x101   :  { %v135_v17 = vadd.f32 %v134_v16, %v681_v14  ;;  %v136_v18 = vpop.f32.mrb[1].mxu0 }
 0x102   :  { %v137_v21 = vadd.f32 %v136_v18, %v681_v14  ;;  %v138_v23 = vpop.f32.mrb[2].mxu0 }
 0x103   :  { %v143_v24 = vadd.f32 %v135_v17, %v75_v15  ;;  %v139_v25 = vadd.f32 %v138_v23, %v684_v20  ;;  %v140_v26 = vpop.f32.mrb[3].mxu0  ;;  %v500_v17 = vld [vmem:[%s740_s6] sm:$0xff]   ;;  %s578_s6 = smov [#allocation7]  }
 0x104   :  { %v141_v28 = vadd.f32 %v140_v26, %v684_v20  ;;  %v144_v29 = vadd.f32 %v137_v21, %v76_v19  ;;  %s468_s22 = sshll.u32 %s578_s6, 4  ;;  %s469_s22 = int_to_ptr.vmem [resolvable:$true] %s468_s22 }
 0x105   :  { %v145_v30 = vadd.f32 %v139_v25, %v77_v22  ;;  %v147_v32 = vmax.f32 %v143_v24, 0.0  ;;  %s545_s23 = scalar_lea.vmem %s469_s22, 1024  ;;  %p550_p3 = scmp.lt.s32.totalorder %s469_s22, %s469_s22 }
 0x106   :  { %v146_v31 = vadd.f32 %v141_v28, %v78_v27  ;;  %v148_v36 = vmax.f32 %v144_v29, 0.0  ;;  %v232_v29 = vpop.permute.xlu1 %231  ;;  %p546_p2 = scmp.ne.s32.totalorder %s469_s22, %s545_s23  ;;  %p551_p4 = scmp.lt.s32.totalorder %s545_s23, %s545_s23 }
 0x107   :  { %v149_v33 = vmax.f32 %v145_v30, 0.0 }
 0x108   :  { %v150_v37 = vmax.f32 %v146_v31, 0.0  ;;  %p552_p5 = por %p551_p4, %p550_p3 }
 0x109   :  { %v151_v38 = vpack.c.bf16 %v149_v33, %v147_v32 }
 0x10a   :  { %v152_v39 = vpack.c.bf16 %v150_v37, %v148_v36  ;;  %p553_p6 = pnand %p552_p5, %p546_p2 }
 0x10c   :  { %171 = vmatprep.subr.bf16.mxu1 %v152_v39 }
 0x10d   :  { %172 = vmatpush1.bf16.msra.mxu1 %v151_v38 }
 0x10e   :  { %305 = vmatprep.subr.bf16.mxu1 %v304_v40 }
 0x110   :  { %484 = vmatmul.mubr.msk.bf16.vlgmr.msra.gmra.mrb[0].mxu1 %vm96_vm0, %v499_v43 }
 0x111   :  { %306 = vmatpush1.bf16.msra.mxu1 %v303_v44  ;;  %337 = vmatprep.mubr.bf16.mxu1 %v577_v0 }
 0x118   :  { %487 = vmatmul.mubr.msk.bf16.vlgmr.msra.gmra.mrb[4].mxu1 %vm96_vm0, %v498_v8 }
 0x119   :  { %443 = vmatprep.mubr.bf16.mxu1 %v577_v0 }
 0x1e3   :  { %v205_v46 = vpop.f32.mrb[0].mxu1 }
 0x1e4   :  { %v206_v47 = vadd.f32 %v205_v46, %v696_v45  ;;  %v207_v48 = vpop.f32.mrb[1].mxu1 }
 0x1e5   :  { %v208_v50 = vadd.f32 %v207_v48, %v696_v45  ;;  %v209_v51 = vpop.f32.mrb[2].mxu1 }
 0x1e6   :  { %v214_v52 = vadd.f32 %v206_v47, %v75_v15  ;;  %v210_v53 = vadd.f32 %v209_v51, %v699_v49  ;;  %v211_v54 = vpop.f32.mrb[3].mxu1 }
 0x1e7   :  { %v215_v55 = vadd.f32 %v208_v50, %v76_v19  ;;  %v212_v56 = vadd.f32 %v211_v54, %v699_v49 }
 0x1e8   :  { %v216_v57 = vadd.f32 %v210_v53, %v77_v22  ;;  %v218_v59 = vmax.f32 %v214_v52, 0.0 }
 0x1e9   :  { %v217_v58 = vadd.f32 %v212_v56, %v78_v27  ;;  %v219_v61 = vmax.f32 %v215_v55, 0.0 }
 0x1ea   :  { %v220_v60 = vmax.f32 %v216_v57, 0.0 }
 0x1eb   :  { %v221_v62 = vmax.f32 %v217_v58, 0.0  ;;  %v339_v1 = vpop.f32.mrb[4].mxu1 }
 0x1ec   :  { %v222_v2 = vpack.c.bf16 %v220_v60, %v218_v59  ;;  %v340_v3 = vadd.f32 %v339_v1, %v681_v14  ;;  %v341_v5 = vpop.f32.mrb[5].mxu1 }
 0x1ed   :  { %v342_v6 = vadd.f32 %v341_v5, %v681_v14  ;;  %v343_v8 = vpop.f32.mrb[6].mxu1  ;;  %v223_v9 = vpack.c.bf16 %v221_v62, %v219_v61 }
 0x1ee   :  { %v348_v10 = vadd.f32 %v340_v3, %v299_v63  ;;  %v344_v11 = vadd.f32 %v343_v8, %v684_v20  ;;  %v345_v13 = vpop.f32.mrb[7].mxu1 }
 0x1ef   :  { %v349_v15 = vadd.f32 %v342_v6, %v300_v4  ;;  %v346_v16 = vadd.f32 %v345_v13, %v684_v20  ;;  %242 = vmatprep.subr.bf16.mxu0 %v223_v9  ;;  %v227_v20 = vpop.permute.xlu0 %226 }
 0x1f0   :  { %v350_v18 = vadd.f32 %v344_v11, %v301_v7  ;;  %243 = vmatpush1.bf16.msra.mxu0 %v222_v2  ;;  %v352_v14 = vmax.f32 %v348_v10, 0.0 }
 0x1f1   :  { %v351_v19 = vadd.f32 %v346_v16, %v302_v12  ;;  %v353_v22 = vmax.f32 %v349_v15, 0.0 }
 0x1f2   :  { %v354_v21 = vmax.f32 %v350_v18, 0.0 }
 0x1f3   :  { %v355_v23 = vmax.f32 %v351_v19, 0.0  ;;  %486 = vmatmul.mubr.msk.bf16.vlgmr.msra.gmra.mrb[4].mxu0 %vm96_vm0, %v500_v17 }
 0x1f4   :  { %v356_v24 = vpack.c.bf16 %v354_v21, %v352_v14  ;;  %390 = vmatprep.mubr.bf16.mxu0 %v577_v0 }
 0x1f5   :  { %v357_v25 = vpack.c.bf16 %v355_v23, %v353_v22 }
 0x1f7   :  { %358 = vmatprep.subr.bf16.mxu0 %v357_v25 }
 0x1f8   :  { %359 = vmatpush1.bf16.msra.mxu0 %v356_v24 }
 0x1fb   :  { %488 = vmatmul.mubr.msk.bf16.vlgmr.msra.gmra.mrb[8].mxu0 %vm96_vm0, %v499_v43 }
 0x2c6   :  { %v276_v26 = vpop.f32.mrb[4].mxu0 }
 0x2c7   :  { %v277_v27 = vadd.f32 %v276_v26, %v227_v20  ;;  %v278_v28 = vpop.f32.mrb[5].mxu0 }
 0x2c8   :  { %v279_v30 = vadd.f32 %v278_v28, %v227_v20  ;;  %v280_v31 = vpop.f32.mrb[6].mxu0 }
 0x2c9   :  { %v285_v32 = vmax.f32 %v277_v27, 0.0  ;;  %v281_v33 = vadd.f32 %v280_v31, %v232_v29  ;;  %v282_v34 = vpop.f32.mrb[7].mxu0 }
 0x2ca   :  { %v286_v35 = vmax.f32 %v279_v30, 0.0  ;;  %v283_v36 = vadd.f32 %v282_v34, %v232_v29 }
 0x2cb   :  { %289 = vst [vmem:[#allocation7] sm:$0xff] %v285_v32  ;;  %v287_v37 = vmax.f32 %v281_v33, 0.0 }
 0x2cc   :  { %290 = vst [vmem:[#allocation7 + $0x8] sm:$0xff] %v286_v35  ;;  %v288_v0 = vmax.f32 %v283_v36, 0.0 }
 0x2cd   :  { %291 = vst [vmem:[#allocation7 + $0x10] sm:$0xff] %v287_v37 }
 0x2ce   :  { %292 = vst [vmem:[#allocation7 + $0x18] sm:$0xff] %v288_v0  ;;  %v392_v38 = vpop.f32.mrb[8].mxu0 }
 0x2cf   :  { %v393_v39 = vadd.f32 %v392_v38, %v696_v45  ;;  %v394_v40 = vpop.f32.mrb[9].mxu0 }
 0x2d0   :  { %v395_v41 = vadd.f32 %v394_v40, %v696_v45  ;;  %v396_v42 = vpop.f32.mrb[10].mxu0 }
 0x2d1   :  { %v401_v43 = vadd.f32 %v393_v39, %v299_v63  ;;  %v397_v44 = vadd.f32 %v396_v42, %v699_v49  ;;  %v398_v46 = vpop.f32.mrb[11].mxu0 }
 0x2d2   :  { %v402_v47 = vadd.f32 %v395_v41, %v300_v4  ;;  %v399_v48 = vadd.f32 %v398_v46, %v699_v49 }
 0x2d3   :  { %v403_v50 = vadd.f32 %v397_v44, %v301_v7  ;;  %v405_v52 = vmax.f32 %v401_v43, 0.0 }
 0x2d4   :  { %v404_v51 = vadd.f32 %v399_v48, %v302_v12  ;;  %v406_v54 = vmax.f32 %v402_v47, 0.0 }
 0x2d5   :  { %v407_v53 = vmax.f32 %v403_v50, 0.0 }
 0x2d6   :  { %v408_v55 = vmax.f32 %v404_v51, 0.0 }
 0x2d7   :  { %v409_v56 = vpack.c.bf16 %v407_v53, %v405_v52 }
 0x2d8   :  { %v410_v57 = vpack.c.bf16 %v408_v55, %v406_v54 }
 0x2da   :  { %411 = vmatprep.subr.bf16.mxu1 %v410_v57 }
 0x2db   :  { %412 = vmatpush1.bf16.msra.mxu1 %v409_v56 }
 0x2de   :  { %489 = vmatmul.mubr.msk.bf16.vlgmr.msra.gmra.mrb[8].mxu1 %vm96_vm0, %v500_v17 }
 0x3b1   :  { %v445_v45 = vpop.f32.mrb[8].mxu1 }
 0x3b2   :  { %v446_v58 = vadd.f32 %v445_v45, %v227_v20  ;;  %v447_v59 = vpop.f32.mrb[9].mxu1 }
 0x3b3   :  { %v448_v60 = vadd.f32 %v447_v59, %v227_v20  ;;  %v449_v61 = vpop.f32.mrb[10].mxu1 }
 0x3b4   :  { %v454_v62 = vmax.f32 %v446_v58, 0.0  ;;  %v450_v63 = vadd.f32 %v449_v61, %v232_v29  ;;  %v451_v49 = vpop.f32.mrb[11].mxu1 }
 0x3b5   :  { %v455_v1 = vmax.f32 %v448_v60, 0.0  ;;  %v452_v2 = vadd.f32 %v451_v49, %v232_v29 }
 0x3b6   :  { %459 = vst [vmem:[#allocation7 + $0x20] sm:$0xff] %v454_v62  ;;  %v456_v3 = vmax.f32 %v450_v63, 0.0 }
 0x3b7   :  { %460 = vst [vmem:[#allocation7 + $0x28] sm:$0xff] %v455_v1  ;;  %v457_v4 = vmax.f32 %v452_v2, 0.0 }
 0x3b8   :  { %461 = vst [vmem:[#allocation7 + $0x30] sm:$0xff] %v456_v3 }
 0x3b9   :  { %462 = vst [vmem:[#allocation7 + $0x38] sm:$0xff] %v457_v4 }
 0x3ba   :  { %556 = shalt.err (!%p553_p6)
}
 0x3bb   :  { %s557_s26 = scalar_lea.hbm %s742_s8, 1024 }
 0x3bc   :  { %p558_p7 = scmp.ne.s32.totalorder %s742_s8, %s557_s26  ;;  %p561_p8 = scmp.lt.u32.totalorder %s557_s26, %s742_s8 }
 0x3be   :  { %p563_p9 = pnand %p561_p8, %p558_p7 }
 0x3c0   :  { %566 = shalt.err (!%p563_p9)
}
 0x3c1   :  { %474 = dma.vmem_to_hbm [thread:$0]  %s469_s22, 1024, %s742_s8, [#allocation4], %s574_s15, %s574_s15, %s575_s16  }
 0x3c2   :  { %571 = dma.done.wait [#allocation4], 1024  }
 0x3c3   :  { %572 = vsyncadd [#allocation4], 4294966272 }
 0x3c4   :  { %478 = vsyncpa [#allocation3], 1 }
 0x3c5   :  { %479 = vsyncpa [#allocation6], 1 }
 0x3c6   :  { %480 = vsyncpa [#allocation4], 1 }

</bundles_post_ra>
